<compile_context>
chip_gen: v7x
topology: tpu7x:2x2x1
jax: 0.10.0
libtpu: 0.0.40
codegen_flags: <defaults>
</compile_context>

<pallas_src>
import functools

import jax
import jax.numpy as jnp
from jax import lax
from jax.experimental import pallas as pl
from jax.experimental.pallas import tpu as pltpu

_MiB = 1024 * 1024
# Conservative working-set target so chosen tiles fit every generation
# (v7x has 64 MiB physical VMEM per TensorCore).
_VMEM_BUDGET = 40 * _MiB
_VMEM_LIMIT_CAP = 56 * _MiB
_VMEM_LIMIT_FLOOR = 16 * _MiB


def _tile_candidates(n, target, gran):
    """Tile sizes t <= target with n % t == 0 and (t % gran == 0 or t == n), descending."""
    cands = []
    for t in range(min(target, n), 0, -1):
        if n % t == 0 and (t % gran == 0 or t == n):
            cands.append(t)
    return cands or [n]


def _clamp_vmem_limit(estimate):
    return int(max(_VMEM_LIMIT_FLOOR, min(int(estimate * 1.3), _VMEM_LIMIT_CAP)))


def _stage1_vmem(ts, E, Dtot, mbytes):
    return 2 * ts * E * mbytes + 2 * E * Dtot * mbytes + 2 * ts * Dtot * mbytes


def _stage2_vmem(tq, S, dk, dv, Do, mbytes, lbytes, obytes):
    kv = 2 * S * (dk + dv) * mbytes          # double-buffered K/V blocks
    qb = 2 * tq * dk * mbytes                # Q tile
    lo = 2 * tq * S * lbytes                 # logits output block
    tmp = 3 * tq * S * 4                     # f32 logits / exp temporaries
    ob = 2 * tq * Do * obytes                # attention output block
    wob = 2 * dv * Do * mbytes               # per-head W_O slab
    acc = tq * Do * 4                        # f32 accumulator scratch
    return kv + qb + lo + tmp + ob + wob + acc


# --------------------------- Stage 1: fused QKV ------------------------------
def _qkv_proj_kernel(x_ref, w_ref, qkv_ref):
    # x_ref: (1, ts, E); w_ref: (E, Dtot); qkv_ref: (1, ts, Dtot)
    qkv_ref[0] = jnp.dot(x_ref[0], w_ref[...],
                         preferred_element_type=jnp.float32).astype(qkv_ref.dtype)


# ----------------- Stage 2: attention + output projection --------------------
def _attn_kernel(q_ref, k_ref, v_ref, wo_ref, out_ref, logits_ref, acc_ref):
    h = pl.program_id(2)
    nh = pl.num_programs(2)

    qb = q_ref[0, 0]     # (tq, dk) — 1/sqrt(dk) already folded into W_Q
    kb = k_ref[0, 0]     # (S,  dk)
    vb = v_ref[0, 0]     # (S,  dv)
    wo = wo_ref[0]       # (dv, Do)

    # logits = q @ k^T via dot_general (no in-kernel transpose), f32 accumulate.
    logits = lax.dot_general(qb, kb, (((1,), (1,)), ((), ())),
                             preferred_element_type=jnp.float32)     # (tq, S)
    logits_ref[0, 0] = logits.astype(logits_ref.dtype)

    # Numerically stable softmax with deferred normalization: the (tq, S)
    # un-normalized weights go straight to the MXU; the reciprocal multiply is
    # applied on the (tq, dv) result and runs on the EUP slot.
    m = jnp.max(logits, axis=-1, keepdims=True)
    e = jnp.exp(logits - m)
    denom = jnp.sum(e, axis=-1, keepdims=True)

    attn_un = jnp.dot(e.astype(vb.dtype), vb,
                      preferred_element_type=jnp.float32)            # (tq, dv)
    attn_h = attn_un * pl.reciprocal(denom, approx=True)             # (tq, dv)

    contrib = jnp.dot(attn_h.astype(wo.dtype), wo,
                      preferred_element_type=jnp.float32)            # (tq, Do)

    @pl.when(h == 0)
    def _():
        acc_ref[...] = contrib

    @pl.when(h > 0)
    def _():
        acc_ref[...] += contrib

    @pl.when(h == nh - 1)
    def _():
        out_ref[0] = acc_ref[...].astype(out_ref.dtype)


def multi_head_attention_pallas(x, wq, wk, wv, wo, *, num_heads,
                                q_tile=256, s_tile=512,
                                matmul_dtype=None, logits_dtype=jnp.float32):
    """Returns (atten_score, logits) matching the PyTorch module forward.

    x  : (B, S, E)
    wq : (Dqk, E), wk : (Dqk, E), wv : (Dv, E), wo : (Do, Dv)
    matmul_dtype: MXU input dtype; defaults to bf16 (f32 accumulation / softmax).
                  Pass jnp.float32 for an exact-f32 path.
    logits_dtype: dtype of the returned (B, H, S, S) logits (f32 by default to
                  match module semantics; bf16 halves the dominant HBM term).
    """
    B, S, E = x.shape
    H = num_heads
    Dqk = wq.shape[0]
    Dv = wv.shape[0]
    Do = wo.shape[0]
    dk = Dqk // H
    dv = Dv // H
    Dtot = 2 * Dqk + Dv
    scale = float(dk) ** -0.5

    mmd = jnp.bfloat16 if matmul_dtype is None else matmul_dtype
    mbytes = jnp.dtype(mmd).itemsize
    lbytes = jnp.dtype(logits_dtype).itemsize
    obytes = jnp.dtype(x.dtype).itemsize
    gran = 16 if mbytes < 4 else 8   # bf16 packs 2 rows per sublane

    # Fused, pre-transposed QKV weight slab; fold the softmax scale into W_Q.
    w_all = jnp.concatenate([wq.T * scale, wk.T, wv.T], axis=1).astype(mmd)  # (E, Dtot)
    wo_h = wo.reshape(Do, H, dv).transpose(1, 2, 0).astype(mmd)              # (H, dv, Do)
    x_in = x.astype(mmd)

    # ---- Stage 1: fused QKV projection, grid = (B, S-tiles) -----------------
    ts = next((t for t in _tile_candidates(S, s_tile, gran)
               if _stage1_vmem(t, E, Dtot, mbytes) <= _VMEM_BUDGET),
              _tile_candidates(S, s_tile, gran)[-1])
    n_s = S // ts

    qkv = pl.pallas_call(
        _qkv_proj_kernel,
        out_shape=jax.ShapeDtypeStruct((B, S, Dtot), mmd),
        grid_spec=pltpu.PrefetchScalarGridSpec(
            num_scalar_prefetch=0,
            grid=(B, n_s),
            in_specs=[
                pl.BlockSpec((1, ts, E), lambda b, si: (b, si, 0)),
                pl.BlockSpec((E, Dtot), lambda b, si: (0, 0)),
            ],
            out_specs=pl.BlockSpec((1, ts, Dtot), lambda b, si: (b, si, 0)),
        ),
        compiler_params=pltpu.CompilerParams(
            dimension_semantics=("parallel", "parallel"),
            vmem_limit_bytes=_clamp_vmem_limit(_stage1_vmem(ts, E, Dtot, mbytes))),
    )(x_in, w_all)

    # Per-head layout for stage 2 (one cheap XLA pass; O(S*D) traffic).
    q = qkv[:, :, :Dqk].reshape(B, S, H, dk).transpose(0, 2, 1, 3)
    k = qkv[:, :, Dqk:2 * Dqk].reshape(B, S, H, dk).transpose(0, 2, 1, 3)
    v = qkv[:, :, 2 * Dqk:].reshape(B, S, H, dv).transpose(0, 2, 1, 3)

    # ---- Stage 2: attention + per-head output projection (reduced over h) ---
    tq_cands = _tile_candidates(S, q_tile, gran)
    tq = next((t for t in tq_cands
               if _stage2_vmem(t, S, dk, dv, Do, mbytes, lbytes, obytes) <= _VMEM_BUDGET),
              tq_cands[-1])
    n_q = S // tq

    atten_score, logits = pl.pallas_call(
        _attn_kernel,
        out_shape=(
            jax.ShapeDtypeStruct((B, S, Do), x.dtype),
            jax.ShapeDtypeStruct((B, H, S, S), logits_dtype),
        ),
        grid_spec=pltpu.PrefetchScalarGridSpec(
            num_scalar_prefetch=0,
            grid=(B, n_q, H),   # head axis innermost = reduction axis for W_O acc
            in_specs=[
                pl.BlockSpec((1, 1, tq, dk), lambda b, qi, h: (b, h, qi, 0)),  # Q tile
                pl.BlockSpec((1, 1, S, dk), lambda b, qi, h: (b, h, 0, 0)),    # K (full)
                pl.BlockSpec((1, 1, S, dv), lambda b, qi, h: (b, h, 0, 0)),    # V (full)
                pl.BlockSpec((1, dv, Do), lambda b, qi, h: (h, 0, 0)),         # W_O head slab
            ],
            out_specs=[
                pl.BlockSpec((1, tq, Do), lambda b, qi, h: (b, qi, 0)),        # accumulated
                pl.BlockSpec((1, 1, tq, S), lambda b, qi, h: (b, h, qi, 0)),   # lane-dense
            ],
            scratch_shapes=[pltpu.VMEM((tq, Do), jnp.float32)],
        ),
        compiler_params=pltpu.CompilerParams(
            dimension_semantics=("parallel", "parallel", "arbitrary"),
            vmem_limit_bytes=_clamp_vmem_limit(
                _stage2_vmem(tq, S, dk, dv, Do, mbytes, lbytes, obytes))),
    )(q, k, v, wo_h)

    return atten_score, logits


def multi_head_attention_ref(x, wq, wk, wv, wo, *, num_heads):
    """Pure-JAX f32 reference replicating the PyTorch forward exactly."""
    B, S, E = x.shape
    Dqk = wq.shape[0]
    Dv = wv.shape[0]
    dk = Dqk // num_heads
    dv = Dv // num_heads
    scale = float(dk) ** -0.5

    q = (x @ wq.T).reshape(B, S, num_heads, dk).transpose(0, 2, 1, 3)
    k = (x @ wk.T).reshape(B, S, num_heads, dk).transpose(0, 2, 1, 3)
    v = (x @ wv.T).reshape(B, S, num_heads, dv).transpose(0, 2, 1, 3)
    logits = jnp.einsum("bhqd,bhkd->bhqk", q, k) * scale
    weights = jax.nn.softmax(logits, axis=-1)
    attn = jnp.einsum("bhqk,bhkd->bhqd", weights, v)
    attn = attn.transpose(0, 2, 1, 3).reshape(B, S, num_heads * dv)
    attn = attn @ wo.T
    return attn, logits


if __name__ == "__main__":
    # Small, module-consistent shapes.
    B, S, E = 2, 8, 32
    num_heads = 8
    dim_qk = 32
    dim_v = 32
    dim_output = 32

    key = jax.random.PRNGKey(0)
    kx, kq, kk, kv, ko = jax.random.split(key, 5)

    x = jax.random.normal(kx, (B, S, E), dtype=jnp.float32)
    # Deterministic synthetic weights (nn.Linear convention: (out, in)).
    wq = 0.1 * jax.random.normal(kq, (dim_qk, E), dtype=jnp.float32)
    wk = 0.1 * jax.random.normal(kk, (dim_qk, E), dtype=jnp.float32)
    wv = 0.1 * jax.random.normal(kv, (dim_v, E), dtype=jnp.float32)
    wo = 0.1 * jax.random.normal(ko, (dim_output, dim_v), dtype=jnp.float32)

    fn = jax.jit(functools.partial(multi_head_attention_pallas,
                                   num_heads=num_heads))
    atten_score, logits = fn(x, wq, wk, wv, wo)
    jax.block_until_ready((atten_score, logits))

    ref_score, ref_logits = multi_head_attention_ref(
        x, wq, wk, wv, wo, num_heads=num_heads)

    assert atten_score.shape == (B, S, dim_output)
    assert logits.shape == (B, num_heads, S, S)
    # bf16 MXU inputs + approx reciprocal -> relaxed tolerances vs the f32 ref.
    assert jnp.allclose(atten_score, ref_score, atol=5e-2, rtol=5e-2)
    assert jnp.allclose(logits, ref_logits, atol=5e-2, rtol=5e-2)

    print("KERNEL_OK")
</pallas_src>

<mosaic_0001>
module attributes {stable_mosaic.version = 11 : i64} {
  func.func @_qkv_proj_kernel(%arg0: i32, %arg1: i32, %arg2: memref<1x8x32xbf16, #tpu.memory_space<vmem>>, %arg3: memref<32x96xbf16, #tpu.memory_space<vmem>>, %arg4: memref<1x8x96xbf16, #tpu.memory_space<vmem>>) attributes {dimension_semantics = [#tpu.dimension_semantics<parallel>, #tpu.dimension_semantics<parallel>], iteration_bounds = array<i64: 2, 1>, scalar_prefetch = 0 : i64, scratch_operands = 0 : i64, tpu.core_type = #tpu.core_type<tc>, window_params = [{transform_indices = @transform_0, window_bounds = array<i64: 1, 8, 32>}, {pipeline_mode = #tpu.pipeline_mode<synchronous>, transform_indices = @transform_1, window_bounds = array<i64: 32, 96>}, {transform_indices = @transform_2, window_bounds = array<i64: 1, 8, 96>}]} {
    %c0 = arith.constant 0 : index
    %c0_0 = arith.constant 0 : index
    %c0_1 = arith.constant 0 : index
    %0 = vector.load %arg2[%c0, %c0_0, %c0_1] : memref<1x8x32xbf16, #tpu.memory_space<vmem>>, vector<1x8x32xbf16>
    %1 = vector.shape_cast %0 : vector<1x8x32xbf16> to vector<8x32xbf16>
    %c0_2 = arith.constant 0 : index
    %c0_3 = arith.constant 0 : index
    %2 = vector.load %arg3[%c0_2, %c0_3] : memref<32x96xbf16, #tpu.memory_space<vmem>>, vector<32x96xbf16>
    %cst = arith.constant dense<0.000000e+00> : vector<8x96xf32>
    %3 = tpu.matmul %1, %2, %cst {dimension_numbers = #tpu.dot_dimension_numbers<[1], [0], [0], [1], [0, 0, 1, 1], [], []>} : vector<8x32xbf16>, vector<32x96xbf16>, vector<8x96xf32> -> vector<8x96xf32>
    %4 = arith.truncf %3 : vector<8x96xf32> to vector<8x96xbf16>
    %c0_4 = arith.constant 0 : index
    %c0_5 = arith.constant 0 : index
    %c0_6 = arith.constant 0 : index
    %5 = vector.load %arg4[%c0_4, %c0_5, %c0_6] : memref<1x8x96xbf16, #tpu.memory_space<vmem>>, vector<1x8x96xbf16>
    %6 = vector.shape_cast %5 : vector<1x8x96xbf16> to vector<8x96xbf16>
    %7 = vector.shape_cast %4 : vector<8x96xbf16> to vector<1x8x96xbf16>
    tpu.vector_store %arg4[%c0_4, %c0_5, %c0_6], %7 {strides = array<i32>} : memref<1x8x96xbf16, #tpu.memory_space<vmem>>, vector<1x8x96xbf16>,
    return
  }
  func.func @transform_0(%arg0: i32, %arg1: i32) -> (i32, i32, i32) {
    %c0_i32 = arith.constant 0 : i32
    %c0_i32_0 = arith.constant 0 : i32
    return %arg0, %arg1, %c0_i32 : i32, i32, i32
  }
  func.func @transform_1(%arg0: i32, %arg1: i32) -> (i32, i32) {
    %c0_i32 = arith.constant 0 : i32
    %c0_i32_0 = arith.constant 0 : i32
    %c0_i32_1 = arith.constant 0 : i32
    return %c0_i32, %c0_i32_0 : i32, i32
  }
  func.func @transform_2(%arg0: i32, %arg1: i32) -> (i32, i32, i32) {
    %c0_i32 = arith.constant 0 : i32
    %c0_i32_0 = arith.constant 0 : i32
    return %arg0, %arg1, %c0_i32 : i32, i32, i32
  }
}

module attributes {stable_mosaic.version = 11 : i64} {
  func.func @_attn_kernel(%arg0: i32, %arg1: i32, %arg2: i32, %arg3: memref<1x1x8x4xbf16, #tpu.memory_space<vmem>>, %arg4: memref<1x1x8x4xbf16, #tpu.memory_space<vmem>>, %arg5: memref<1x1x8x4xbf16, #tpu.memory_space<vmem>>, %arg6: memref<1x4x32xbf16, #tpu.memory_space<vmem>>, %arg7: memref<1x8x32xf32, #tpu.memory_space<vmem>>, %arg8: memref<1x1x8x8xf32, #tpu.memory_space<vmem>>, %arg9: memref<8x32xf32, #tpu.memory_space<vmem>>) attributes {dimension_semantics = [#tpu.dimension_semantics<parallel>, #tpu.dimension_semantics<parallel>, #tpu.dimension_semantics<arbitrary>], iteration_bounds = array<i64: 2, 1, 8>, scalar_prefetch = 0 : i64, scratch_operands = 1 : i64, tpu.core_type = #tpu.core_type<tc>, window_params = [{transform_indices = @transform_0, window_bounds = array<i64: 1, 1, 8, 4>}, {transform_indices = @transform_1, window_bounds = array<i64: 1, 1, 8, 4>}, {transform_indices = @transform_2, window_bounds = array<i64: 1, 1, 8, 4>}, {transform_indices = @transform_3, window_bounds = array<i64: 1, 4, 32>}, {transform_indices = @transform_4, window_bounds = array<i64: 1, 8, 32>}, {transform_indices = @transform_5, window_bounds = array<i64: 1, 1, 8, 8>}]} {
    %c0 = arith.constant 0 : index
    %c0_0 = arith.constant 0 : index
    %c0_1 = arith.constant 0 : index
    %c0_2 = arith.constant 0 : index
    %0 = vector.load %arg3[%c0, %c0_0, %c0_1, %c0_2] : memref<1x1x8x4xbf16, #tpu.memory_space<vmem>>, vector<1x1x8x4xbf16>
    %1 = vector.shape_cast %0 : vector<1x1x8x4xbf16> to vector<8x4xbf16>
    %c0_3 = arith.constant 0 : index
    %c0_4 = arith.constant 0 : index
    %c0_5 = arith.constant 0 : index
    %c0_6 = arith.constant 0 : index
    %2 = vector.load %arg4[%c0_3, %c0_4, %c0_5, %c0_6] : memref<1x1x8x4xbf16, #tpu.memory_space<vmem>>, vector<1x1x8x4xbf16>
    %3 = vector.shape_cast %2 : vector<1x1x8x4xbf16> to vector<8x4xbf16>
    %c0_7 = arith.constant 0 : index
    %c0_8 = arith.constant 0 : index
    %c0_9 = arith.constant 0 : index
    %c0_10 = arith.constant 0 : index
    %4 = vector.load %arg5[%c0_7, %c0_8, %c0_9, %c0_10] : memref<1x1x8x4xbf16, #tpu.memory_space<vmem>>, vector<1x1x8x4xbf16>
    %5 = vector.shape_cast %4 : vector<1x1x8x4xbf16> to vector<8x4xbf16>
    %c0_11 = arith.constant 0 : index
    %c0_12 = arith.constant 0 : index
    %c0_13 = arith.constant 0 : index
    %6 = vector.load %arg6[%c0_11, %c0_12, %c0_13] : memref<1x4x32xbf16, #tpu.memory_space<vmem>>, vector<1x4x32xbf16>
    %7 = vector.shape_cast %6 : vector<1x4x32xbf16> to vector<4x32xbf16>
    %cst = arith.constant dense<0.000000e+00> : vector<8x8xf32>
    %8 = tpu.matmul %1, %3, %cst {dimension_numbers = #tpu.dot_dimension_numbers<[1], [1], [0], [0], [0, 0, 1, 0], [], []>} : vector<8x4xbf16>, vector<8x4xbf16>, vector<8x8xf32> -> vector<8x8xf32>
    %c0_14 = arith.constant 0 : index
    %c0_15 = arith.constant 0 : index
    %c0_16 = arith.constant 0 : index
    %c0_17 = arith.constant 0 : index
    %9 = vector.load %arg8[%c0_14, %c0_15, %c0_16, %c0_17] : memref<1x1x8x8xf32, #tpu.memory_space<vmem>>, vector<1x1x8x8xf32>
    %10 = vector.shape_cast %9 : vector<1x1x8x8xf32> to vector<8x8xf32>
    %11 = vector.shape_cast %8 : vector<8x8xf32> to vector<1x1x8x8xf32>
    tpu.vector_store %arg8[%c0_14, %c0_15, %c0_16, %c0_17], %11 {strides = array<i32>} : memref<1x1x8x8xf32, #tpu.memory_space<vmem>>, vector<1x1x8x8xf32>,
    %cst_18 = arith.constant dense<0xFF800000> : vector<8xf32>
    %12 = vector.multi_reduction <maximumf>, %8, %cst_18 [1] : vector<8x8xf32> to vector<8xf32>
    %13 = vector.shape_cast %12 : vector<8xf32> to vector<8x1xf32>
    %14 = vector.broadcast %13 : vector<8x1xf32> to vector<8x8xf32>
    %15 = arith.subf %8, %14 : vector<8x8xf32>
    %16 = math.exp %15 : vector<8x8xf32>
    %cst_19 = arith.constant dense<0.000000e+00> : vector<8xf32>
    %17 = vector.multi_reduction <add>, %16, %cst_19 [1] : vector<8x8xf32> to vector<8xf32>
    %18 = vector.shape_cast %17 : vector<8xf32> to vector<8x1xf32>
    %19 = arith.truncf %16 : vector<8x8xf32> to vector<8x8xbf16>
    %cst_20 = arith.constant dense<0.000000e+00> : vector<8x4xf32>
    %20 = tpu.matmul %19, %5, %cst_20 {dimension_numbers = #tpu.dot_dimension_numbers<[1], [0], [0], [1], [0, 0, 1, 1], [], []>} : vector<8x8xbf16>, vector<8x4xbf16>, vector<8x4xf32> -> vector<8x4xf32>
    %21 = tpu.reciprocal %18 {approx = true} : vector<8x1xf32> -> vector<8x1xf32>
    %22 = vector.broadcast %21 : vector<8x1xf32> to vector<8x4xf32>
    %23 = arith.mulf %20, %22 : vector<8x4xf32>
    %24 = arith.truncf %23 : vector<8x4xf32> to vector<8x4xbf16>
    %cst_21 = arith.constant dense<0.000000e+00> : vector<8x32xf32>
    %25 = tpu.matmul %24, %7, %cst_21 {dimension_numbers = #tpu.dot_dimension_numbers<[1], [0], [0], [1], [0, 0, 1, 1], [], []>} : vector<8x4xbf16>, vector<4x32xbf16>, vector<8x32xf32> -> vector<8x32xf32>
    %c0_i32 = arith.constant 0 : i32
    %26 = arith.cmpi eq, %arg2, %c0_i32 : i32
    %27 = arith.extui %26 : i1 to i32
    %c0_i32_22 = arith.constant 0 : i32
    %28 = arith.cmpi ne, %27, %c0_i32_22 : i32
    scf.if %28 {
      %c0_26 = arith.constant 0 : index
      %c0_27 = arith.constant 0 : index
      %35 = vector.load %arg9[%c0_26, %c0_27] : memref<8x32xf32, #tpu.memory_space<vmem>>, vector<8x32xf32>
      tpu.vector_store %arg9[%c0_26, %c0_27], %25 {strides = array<i32>} : memref<8x32xf32, #tpu.memory_space<vmem>>, vector<8x32xf32>,
    } else {
    }
    %c0_i32_23 = arith.constant 0 : i32
    %29 = arith.cmpi sgt, %arg2, %c0_i32_23 : i32
    %30 = arith.extui %29 : i1 to i32
    %c0_i32_24 = arith.constant 0 : i32
    %31 = arith.cmpi ne, %30, %c0_i32_24 : i32
    scf.if %31 {
      %c0_26 = arith.constant 0 : index
      %c0_27 = arith.constant 0 : index
      %35 = vector.load %arg9[%c0_26, %c0_27] : memref<8x32xf32, #tpu.memory_space<vmem>>, vector<8x32xf32>
      %36 = arith.addf %35, %25 : vector<8x32xf32>
      %c0_28 = arith.constant 0 : index
      %c0_29 = arith.constant 0 : index
      %37 = vector.load %arg9[%c0_28, %c0_29] : memref<8x32xf32, #tpu.memory_space<vmem>>, vector<8x32xf32>
      tpu.vector_store %arg9[%c0_28, %c0_29], %36 {strides = array<i32>} : memref<8x32xf32, #tpu.memory_space<vmem>>, vector<8x32xf32>,
    } else {
    }
    %c7_i32 = arith.constant 7 : i32
    %32 = arith.cmpi eq, %arg2, %c7_i32 : i32
    %33 = arith.extui %32 : i1 to i32
    %c0_i32_25 = arith.constant 0 : i32
    %34 = arith.cmpi ne, %33, %c0_i32_25 : i32
    scf.if %34 {
      %c0_26 = arith.constant 0 : index
      %c0_27 = arith.constant 0 : index
      %35 = vector.load %arg9[%c0_26, %c0_27] : memref<8x32xf32, #tpu.memory_space<vmem>>, vector<8x32xf32>
      %c0_28 = arith.constant 0 : index
      %c0_29 = arith.constant 0 : index
      %c0_30 = arith.constant 0 : index
      %36 = vector.load %arg7[%c0_28, %c0_29, %c0_30] : memref<1x8x32xf32, #tpu.memory_space<vmem>>, vector<1x8x32xf32>
      %37 = vector.shape_cast %36 : vector<1x8x32xf32> to vector<8x32xf32>
      %38 = vector.shape_cast %35 : vector<8x32xf32> to vector<1x8x32xf32>
      tpu.vector_store %arg7[%c0_28, %c0_29, %c0_30], %38 {strides = array<i32>} : memref<1x8x32xf32, #tpu.memory_space<vmem>>, vector<1x8x32xf32>,
    } else {
    }
    return
  }
  func.func @transform_0(%arg0: i32, %arg1: i32, %arg2: i32) -> (i32, i32, i32, i32) {
    %c0_i32 = arith.constant 0 : i32
    %c0_i32_0 = arith.constant 0 : i32
    return %arg0, %arg2, %arg1, %c0_i32 : i32, i32, i32, i32
  }
  func.func @transform_1(%arg0: i32, %arg1: i32, %arg2: i32) -> (i32, i32, i32, i32) {
    %c0_i32 = arith.constant 0 : i32
    %c0_i32_0 = arith.constant 0 : i32
    %c0_i32_1 = arith.constant 0 : i32
    return %arg0, %arg2, %c0_i32, %c0_i32_0 : i32, i32, i32, i32
  }
  func.func @transform_2(%arg0: i32, %arg1: i32, %arg2: i32) -> (i32, i32, i32, i32) {
    %c0_i32 = arith.constant 0 : i32
    %c0_i32_0 = arith.constant 0 : i32
    %c0_i32_1 = arith.constant 0 : i32
    return %arg0, %arg2, %c0_i32, %c0_i32_0 : i32, i32, i32, i32
  }
  func.func @transform_3(%arg0: i32, %arg1: i32, %arg2: i32) -> (i32, i32, i32) {
    %c0_i32 = arith.constant 0 : i32
    %c0_i32_0 = arith.constant 0 : i32
    %c0_i32_1 = arith.constant 0 : i32
    return %arg2, %c0_i32, %c0_i32_0 : i32, i32, i32
  }
  func.func @transform_4(%arg0: i32, %arg1: i32, %arg2: i32) -> (i32, i32, i32) {
    %c0_i32 = arith.constant 0 : i32
    %c0_i32_0 = arith.constant 0 : i32
    return %arg0, %arg1, %c0_i32 : i32, i32, i32
  }
  func.func @transform_5(%arg0: i32, %arg1: i32, %arg2: i32) -> (i32, i32, i32, i32) {
    %c0_i32 = arith.constant 0 : i32
    %c0_i32_0 = arith.constant 0 : i32
    return %arg0, %arg2, %arg1, %c0_i32 : i32, i32, i32, i32
  }
}

</mosaic_0001>

<bundles_post_ra>
// kernel: multi_head_attention_pallas.2
= control target key start
LH: loop header
LB: loop body
LE: loop exit
PB: predicated region body
PF: predicated region fallthrough
CT: control target
= control target key end

     0   :  { %s401_s9 = smov 0   ;;  %s403_s10 = smov 0   ;;  %s440_s0 = inlined_call_operand.vmem [shape: bf16[2,8,32], index: 0, kind: input, shape index: {}]   ;;  %s441_s1 = inlined_call_operand.vmem [shape: bf16[32,96], index: 1, kind: input, shape index: {}]   ;;  %s442_s2 = inlined_call_operand.vmem [shape: bf16[2,8,96], index: 2, kind: output, shape index: {}]  }
   0x1   :  { %s405_s11 = smov 0  }
   0x2 LB: > { %s24_s12 = sadd.s32 1, %s378_s10  ;;  %p313_p0 = scmp.ge.s32.totalorder %s382_s11, 1  ;;  %s382_s11 = sphi %s405_s11, %s12_s11   ;;  %s378_s10 = sphi %s403_s10, %s444_s10   ;;  %s374_s9 = sphi %s401_s9, %s443_s9  }
   0x3   : > { %p26_p1 = scmp.ge.s32.totalorder %s24_s12, 2  ;;  %p130_p2 = scmp.lt.s32.totalorder %s382_s11, 3 }
   0x5   : > { %s446_s12 = smov (%p26_p1, %s24_s12), 0  ;;  %p131_p3 = pnand %p313_p0, %p130_p2 }
   0x6   : > { %v358_v0 = vld [vmem:[%s441_s1] sm:$0xff] (!%p131_p3)   ;;  %v384_v1 = vmov (!%p131_p3), 0.0   ;;  %v359_v2 = vld [vmem:[%s441_s1 + $0x8] sm:$0xff] (!%p131_p3)   ;;  %vm385_vm0 = vmmov (!%p131_p3), 0   ;;  %p156_p4 = scmp.lt.s32.totalorder (!%p131_p3), %s374_s9, 1  ;;  %vm188_vm1 = vcmask (!%p131_p3), 261120  }
   0x7   : > { %134 = sbr.rel (%p131_p3) target bundleno = 233 (0xe9), region = 28  ;;  %324 = vmatprep.subr.bf16.mxu0 (!%p131_p3), %v384_v1  ;;  %328 = vmatprep.mubr.msk.bf16.mxu0 (!%p131_p3), %vm385_vm0, %v384_v1  ;;  %vm233_vm2 = vcmask (!%p131_p3), 781312  }
   0x8   : > { %325 = vmatpush3.bf16.msra.mxu0 (!%p131_p3), %v358_v0 }
   0x9   : > { %326 = vmatprep.subr.bf16.mxu0 (!%p131_p3), %v384_v1 }
   0xc   : > { %327 = vmatpush3.bf16.msra.mxu0 (!%p131_p3), %v359_v2 }
   0xe   : > { %s448_s9 = smov (!%p156_p4, %s374_s9), 1 }
   0xf   : > { %s314_s17 = sshll.u32 %s448_s9, 2 }
  0x10   : > { %s162_s20 = scalar_lea.vmem %s440_s0, %s314_s17  ;;  %s169_s23 = scalar_lea.vmem %s442_s2, %s314_s17 }
  0x11   : > { %v171_v3 = vld [vmem:[%s162_s20] sm:$0xf] }
  0x12   : > { %329 = vmatmul.mubr.msk.bf16.vlgmr.msra.gmra.mrb[0].mxu0 %vm188_vm1, %v171_v3 }
  0xe5   : > { %v226_v4 = vpop.f32.mrb[0].mxu0 }
  0xe6   : > { %v232_v5 = vpack.c.bf16 %v226_v4, %v226_v4  ;;  %v330_v6 = vpop.f32.mrb[1].mxu0 }
  0xe7   : > { %v229_v7 = vpop.f32.mrb[2].mxu0 }
  0xe8   : > { %234 = vst.msk [vmem:[%s169_s23] sm:$0xf] %vm233_vm2, %v232_v5  ;;  %v331_v8 = vpop.f32.mrb[3].mxu0 }
  0xe9 PF: > { %s12_s11 = sadd.s32 1, %s382_s11   ;;  %s443_s9 = smov %s378_s10 }
  0xea   : > { %p9_p5 = scmp.ge.s32.totalorder %s12_s11, 4   ;;  %s444_s10 = smov %s446_s12 }
  0xec   :  { %11 = sbr.rel (!%p9_p5) target bundleno = 2 (0x2), region = 58 }

// kernel: multi_head_attention_pallas.3
= control target key start
LH: loop header
LB: loop body
LE: loop exit
PB: predicated region body
PF: predicated region fallthrough
CT: control target
= control target key end

     0   :  { %s1344_s0 = inlined_call_operand.vmem [shape: bf16[2,8,8,4], index: 0, kind: input, shape index: {}]   ;;  %s1345_s1 = inlined_call_operand.vmem [shape: bf16[2,8,8,4], index: 1, kind: input, shape index: {}]   ;;  %s1346_s2 = inlined_call_operand.vmem [shape: bf16[2,8,8,4], index: 2, kind: input, shape index: {}]   ;;  %s1347_s3 = inlined_call_operand.vmem [shape: bf16[8,4,32], index: 3, kind: input, shape index: {}]   ;;  %s1348_s4 = inlined_call_operand.hbm [shape: f32[2,8,32], index: 4, kind: output, shape index: {0}]   ;;  %s1349_s5 = inlined_call_operand.hbm [shape: f32[2,8,8,8], index: 5, kind: output, shape index: {1}]  }
   0x1   :  { %1358 = sst [smem:[#allocation16_spill]] %s1344_s0 }
   0x2   :  { %11 = vsyncpa [#allocation4], 0 }
   0x3   :  { %13 = vsyncpa [#allocation4 + $0x1], 0 }
   0x4   :  { %14 = vsyncpa [#allocation6], 0 }
   0x5   :  { %16 = vsyncpa [#allocation6 + $0x1], 0  ;;  %s1087_s18 = smov 0   ;;  %s1089_s19 = smov 0  }
   0x6   :  { %s1091_s20 = smov 0   ;;  %s1093_s21 = smov 0  }
   0x7   :  { %s1095_s22 = smov 0   ;;  %s1097_s23 = smov 0  }
   0x8   :  { %s1099_s24 = smov 0   ;;  %s1101_s25 = smov 0  }
   0x9   :  { %s1103_s26 = smov 0   ;;  %s1105_s27 = smov 0  }
   0xa   :  { %s1107_s28 = smov 0  }
   0xb LB: > { %1359 = sst [smem:[#allocation9_spill]] %s1031_s23  ;;  %s744_s29 = sadd.s32 4294967295, %s1051_s28   ;;  %s1051_s28 = sphi %s1107_s28, %s22_s28   ;;  %s1047_s27 = sphi %s1105_s27, %s1383_s27   ;;  %s1043_s26 = sphi %s1103_s26, %s1382_s26   ;;  %s1039_s25 = sphi %s1101_s25, %s1381_s25   ;;  %s1035_s24 = sphi %s1099_s24, %s1380_s24   ;;  %s1031_s23 = sphi %s1097_s23, %s1379_s23   ;;  %s1027_s22 = sphi %s1095_s22, %s1388_s22   ;;  %s1023_s21 = sphi %s1093_s21, %s1387_s21   ;;  %s1019_s20 = sphi %s1091_s20, %s1386_s20   ;;  %s1015_s19 = sphi %s1089_s19, %s1385_s19   ;;  %s1011_s18 = sphi %s1087_s18, %s1384_s18  }
   0xc   : > { %1360 = sst [smem:[#allocation10_spill]] %s1043_s26  ;;  %s745_s30 = sadd.s32 4294967294, %s1051_s28  }
   0xd   : > { %1361 = sst [smem:[#allocation11_spill]] %s1047_s27  ;;  %s34_s6 = sadd.s32 1, %s1043_s26 }
   0xe   : > { %s41_s7 = sadd.s32 1, %s1047_s27  ;;  %p35_p0 = scmp.ge.s32.totalorder %s34_s6, 8 }
   0xf   : > { %s162_s8 = sadd.s32 1, %s1031_s23  ;;  %p172_p1 = scmp.ne.s32.totalorder %s1031_s23, %s1027_s22 }
  0x10   : > { %p1149_p2 = scmp.eq.s32.totalorder %s744_s29, 15  ;;  %s1390_s6 = smov (%p35_p0, %s34_s6), 0 }
  0x11   : > { %1363 = sst [smem:[#allocation12_spill]] %s1390_s6  ;;  %s1392_s7 = smov (!%p35_p0, %s41_s7), %s1047_s27 }
  0x12   : > { %p1158_p3 = por %p1149_p2, %p172_p1  ;;  %p178_p4 = scmp.ne.s32.totalorder %s1027_s22, %s1023_s21 }
  0x13   : > { %p43_p5 = scmp.ge.s32.totalorder %s1392_s7, 2  ;;  %p1164_p6 = scmp.eq.s32.totalorder %s745_s30, 15 }
  0x14   : > { %s186_s12 = ssub.s32 %s1043_s26, %s1390_s6  ;;  %s192_s13 = sadd.s32 1, %s1019_s20 }
  0x15   : > { %s1394_s7 = smov (%p43_p5, %s1392_s7), 0  ;;  %p1175_p7 = por %p1164_p6, %p178_p4 }
  0x16   : > { %1366 = sst [smem:[#allocation13_spill]] %s1394_s7  ;;  %p202_p8 = scmp.ne.s32.totalorder %s1019_s20, %s1015_s19 }
  0x17   : > { %s157_s15 = ssub.s32 %s1047_s27, %s1394_s7  ;;  %p208_p9 = scmp.ne.s32.totalorder %s1015_s19, %s1011_s18 }
  0x18   : > { %p160_p10 = scmp.eq.s32.totalorder %s157_s15, 0  ;;  %s187_s16 = sor.u32 %s186_s12, %s157_s15 }
  0x19   : > { %p190_p11 = scmp.eq.s32.totalorder %s187_s16, 0  ;;  %p1187_p12 = por %p202_p8, %p1149_p2 }
  0x1a   : > { %s1192_s29 = scalar_select %p160_p10, %s1031_s23, %s162_s8  }
  0x1b   : > { %s1195_s30 = scalar_select %p190_p11, %s1019_s20, %s192_s13  }
  0x1c   : > { %1369 = sst [smem:[#allocation14_spill]] %s1192_s29  ;;  %p1199_p13 = por %p208_p9, %p1164_p6 }
  0x1d   : > { %1370 = sst [smem:[#allocation15_spill]] %s1195_s30  ;;  %p748_p0 = scmp.ge.s32.totalorder %s1051_s28, 1 }
  0x1e   : > { %s1371_s6 = scalar_select %p1199_p13, 1, 0 }
  0x1f   : > { %p270_p1 = scmp.lt.s32.totalorder %s1051_s28, 17 }
  0x21   : > { %p271_p4 = pnand %p748_p0, %p270_p1 }
  0x22   : > { %s1351_s9 = sand.u32 (!%p271_p4), 1, %s1027_s22   ;;  %p329_p2 = scmp.lt.s32.totalorder (!%p271_p4), %s1039_s25, 1  ;;  %v1053_v0 = vmov (!%p271_p4), 0.0   ;;  %vm1054_vm0 = vmmov (!%p271_p4), 0   ;;  %vm365_vm1 = vcmask (!%p271_p4), 31744   ;;  %vm412_vm2 = vcmask (!%p271_p4), 64512  }
  0x23   : > { %274 = sbr.rel (%p271_p4) target bundleno = 929 (0x3a1), region = 36  ;;  %s1209_s8 = sshll.u32 (!%p271_p4), %s1351_s9, 3  ;;  %777 = vmatprep.subr.bf16.mxu0 (!%p271_p4), %v1053_v0  ;;  %779 = vmatprep.mubr.msk.bf16.mxu0 (!%p271_p4), %vm1054_vm0, %v1053_v0  ;;  %vm427_vm3 = vcmask (!%p271_p4), 1043456   ;;  %vm477_vm4 = vcmask (!%p271_p4), 1041408  }
  0x24   : > { %p331_p5 = scmp.lt.s32.totalorder (!%p271_p4), %s1035_s24, 7  ;;  %783 = vmatprep.subr.bf16.mxu1 (!%p271_p4), %v1053_v0  ;;  %785 = vmatprep.mubr.msk.bf16.mxu1 (!%p271_p4), %vm1054_vm0, %v1053_v0  ;;  %s1372_s0 = sld [smem:[#allocation16_spill]] (!%p271_p4) }
  0x25   : > { %s1356_s30 = sand.u32 (!%p271_p4), 1, %s1015_s19   ;;  %p761_p6 = scmp.ne.s32.totalorder (!%p271_p4), %s1035_s24, 0 }
  0x2a   : > { %s330_s11 = scalar_select %p329_p2, %s1039_s25, 1 }
  0x2b   : > { %s1216_s12 = scalar_select %p331_p5, %s1035_s24, 7 }
  0x2c   : > { %s751_s13 = sshll.u32 %s330_s11, 3  ;;  %s1230_s11 = sshll.u32 %s1356_s30, 3  ;;  %vm525_vm5 = vcmask (!%p761_p6), 261120  }
  0x2d   : > { %s337_s15 = sadd.s32 %s751_s13, %s1216_s12  ;;  %s1357_s7 = scalar_lea.vmem [#allocation5], %s1230_s11 }
  0x2e   : > { %s752_s16 = sshll.u32 %s337_s15, 2  ;;  %s757_s29 = sshll.u32 %s1216_s12, 1 }
  0x2f   : > { %s347_s27 = scalar_lea.vmem %s1345_s1, %s752_s16  ;;  %s339_s23 = scalar_lea.vmem %s1372_s0, %s752_s16 }
  0x30   : > { %v362_v1 = vld [vmem:[%s347_s27] sm:$0xf]  ;;  %s355_s27 = scalar_lea.vmem %s1346_s2, %s752_s16  ;;  %s359_s15 = scalar_lea.vmem %s1347_s3, %s757_s29 }
  0x31   : > { %v370_v2 = vsel %vm365_vm1, %v362_v1, 0  ;;  %v361_v3 = vld [vmem:[%s339_s23] sm:$0xf]  ;;  %s321_s12 = scalar_lea.vmem [#allocation3], %s1209_s8 }
  0x32   : > { %778 = vmatpush3.bf16.xpose.msra.mxu0 %v370_v2  ;;  %v363_v9 = vld [vmem:[%s355_s27] sm:$0xf] }
  0x33   : > { %v429_v10 = vsel %vm427_vm3, %v363_v9, 0  ;;  %v364_v17 = vld [vmem:[%s359_s15] sm:$0x3] }
  0x34   : > { %784 = vmatpush3.bf16.msra.mxu1 %v429_v10  ;;  %v479_v18 = vsel %vm477_vm4, %v364_v17, 0 }
  0x35   : > { %789 = vmatprep.subr.bf16.mxu1 %v1053_v0 }
  0x39   : > { %780 = vmatmul.mubr.msk.bf16.vlgmr.msra.gmra.mrb[0].mxu0 %vm365_vm1, %v361_v3 }
 0x10c   : > { %v406_v4 = vpop.f32.mrb[0].mxu0 }
 0x10d   : > { %413 = vst.msk [vmem:[%s1357_s7] sm:$0xff] %vm412_vm2, %v406_v4  ;;  %v781_v5 = vpop.f32.mrb[1].mxu0  ;;  %v414_v6 = vsel %vm412_vm2, %v406_v4, -inf }
 0x10e   : > { %415 = vmax.xlane.f32.xlu0 %v414_v6  ;;  %v409_v7 = vpop.f32.mrb[2].mxu0 }
 0x10f   : > { %v782_v8 = vpop.f32.mrb[3].mxu0 }
 0x19b   : > { %v416_v11 = vpop.xlane.xlu0 %415 }
 0x19c   : > { %v417_v12 = vsub.f32 %v406_v4, %v416_v11 }
 0x19e   : > { %v418_v13 = vmul.f32 1.442695, %v417_v12 }
 0x1a0   : > { %897 = vpow2.f32 %v418_v13 }
 0x1aa   : > { %v898_v14 = vpop.eup %897 }
 0x1ab   : > { %v420_v15 = vsel %vm412_vm2, %v898_v14, 0.0  ;;  %v423_v16 = vpack.c.bf16 %v898_v14, %v898_v14 }
 0x1ac   : > { %421 = vadd.xlane.f32.xlu0 %v420_v15 }
 0x1ad   : > { %786 = vmatmul.mubr.msk.bf16.vlgmr.msra.gmra.mrb[0].mxu1 %vm412_vm2, %v423_v16 }
 0x1ae   : > { %791 = vmatprep.mubr.msk.bf16.mxu1 %vm1054_vm0, %v1053_v0  ;;  %790 = vmatpush3.bf16.msra.mxu1 %v479_v18 }
 0x239   : > { %v422_v19 = vpop.xlane.xlu0 %421 }
 0x23a   : > { %899 = vrcp.f32 %v422_v19 }
 0x244   : > { %v900_v20 = vpop.eup %899 }
 0x280   : > { %v465_v21 = vpop.f32.mrb[0].mxu1 }
 0x281   : > { %v472_v22 = vmul.f32 %v900_v20, %v465_v21  ;;  %v787_v23 = vpop.f32.mrb[1].mxu1 }
 0x282   : > { %v468_v24 = vpop.f32.mrb[2].mxu1 }
 0x283   : > { %v473_v25 = vpack.c.bf16 %v472_v22, %v472_v22  ;;  %v788_v26 = vpop.f32.mrb[3].mxu1 }
 0x285   : > { %792 = vmatmul.mubr.msk.bf16.vlgmr.msra.gmra.mrb[4].mxu1 %vm365_vm1, %v473_v25 }
 0x355   : > { %524 = sbr.rel (%p761_p6) target bundleno = 860 (0x35c), region = 40 }
 0x358   : > { %v515_v27 = vpop.f32.mrb[4].mxu1 }
 0x359   : > { %v793_v28 = vpop.f32.mrb[5].mxu1  ;;  %526 = vst.msk [vmem:[#allocation2] sm:$0xff] (!%p761_p6), %vm525_vm5, %v515_v27 }
 0x35a   : > { %v518_v29 = vpop.f32.mrb[6].mxu1 }
 0x35b   : > { %v794_v30 = vpop.f32.mrb[7].mxu1 }
 0x35c PF: > { %p762_p8 = scmp.le.s32.totalorder %s1035_s24, 0 }
 0x35d   : > { %vm533_vm6 = vcmask (!%p762_p8), 261120  }
 0x35e   : > { %530 = sbr.rel (%p762_p8) target bundleno = 869 (0x365), region = 44 }
 0x360   : > { %v531_v31 = vld [vmem:[#allocation2] sm:$0xff] (!%p762_p8) }
 0x361   : > { %v532_v32 = vadd.f32 (!%p762_p8), %v531_v31, %v515_v27 }
 0x363   : > { %534 = vst.msk [vmem:[#allocation2] sm:$0xff] (!%p762_p8), %vm533_vm6, %v532_v32 }
 0x365 PF: > { %p763_p9 = scmp.ne.s32.totalorder %s1035_s24, 7 }
 0x366   : > { %vm540_vm7 = vcmask (!%p763_p9), 261120  }
 0x367   : > { %538 = sbr.rel (%p763_p9) target bundleno = 878 (0x36e), region = 48 }
 0x36a   : > { %v539_v33 = vld [vmem:[#allocation2] sm:$0xff] (!%p763_p9) }
 0x36b   : > { %541 = vst.msk [vmem:[%s321_s12] sm:$0xff] (!%p763_p9), %vm540_vm7, %v539_v33 }
 0x36e PF: > { %s766_s8 = sshll.u32 %s1039_s25, 7  ;;  %s562_s27 = sshll.u32 %s321_s12, 4  ;;  %s563_s27 = int_to_ptr.vmem [resolvable:$true] %s562_s27 }
 0x36f   : > { %s1256_s26 = scalar_lea.hbm %s1348_s4, %s766_s8  ;;  %s1373_s29 = sand.u32 1, %s1027_s22  }
 0x370   : > { %s543_s9 = scalar_lea.sflag [#allocation4], %s1373_s29  ;;  %s901_s13 = scalar_lea.vmem %s563_s27, 128 }
 0x371   : > { %p902_p10 = scmp.ne.s32.totalorder %s563_s27, %s901_s13  ;;  %s1055_s15 = smov [#allocation3]  }
 0x372   : > { %s905_s30 = sshll.u32 %s1055_s15, 4  ;;  %s906_s30 = int_to_ptr.vmem [resolvable:$false] %s905_s30 }
 0x373   : > { %p903_p11 = pnand %p902_p10, %p1158_p3  ;;  %s907_s7 = scalar_lea.vmem %s906_s30, 256 }
 0x374   : > { %p908_p1 = scmp.lt.s32.totalorder %s563_s27, %s906_s30  ;;  %p909_p4 = scmp.lt.s32.totalorder %s907_s7, %s901_s13 }
 0x375   : > { %p904_p0 = pneg %p903_p11 }
 0x376   : > { %p910_p2 = por %p909_p4, %p908_p1 }
 0x378   : > { %p911_p5 = pnand %p910_p2, %p904_p0 }
 0x37a   : > { %914 = shalt.err (!%p911_p5)
}
 0x37b   : > { %s915_s12 = scalar_lea.hbm %s1256_s26, 128  ;;  %s919_s23 = scalar_lea.hbm %s1348_s4, 256 }
 0x37c   : > { %p916_p6 = scmp.ne.s32.totalorder %s1256_s26, %s915_s12  ;;  %p920_p10 = scmp.lt.u32.totalorder %s1256_s26, %s1348_s4 }
 0x37d   : > { %p921_p11 = scmp.lt.u32.totalorder %s919_s23, %s915_s12  ;;  %p923_p1 = scmp.lt.u32.totalorder %s915_s12, %s1256_s26 }
 0x37e   : > { %p917_p8 = pnand %p916_p6, %p1158_p3 }
 0x37f   : > { %p922_p0 = por %p921_p11, %p920_p10 }
 0x380   : > { %p918_p9 = pneg %p917_p8 }
 0x381   : > { %p924_p4 = por %p923_p1, %p922_p0 }
 0x383   : > { %p925_p2 = pnand %p924_p4, %p918_p9 }
 0x385   : > { %928 = shalt.err (!%p925_p2)
}
 0x386   : > { %795 = dma.vmem_to_hbm [thread:$0]  (%p1158_p3), %s563_s27, 128, %s1256_s26, %s543_s9  }
 0x387   : > { %s767_s7 = sshll.u32 %s1039_s25, 3  ;;  %s1374_s13 = scalar_lea.vmem [#allocation5], %s1230_s11 }
 0x388   : > { %s578_s15 = sshll.u32 %s1374_s13, 4  ;;  %s574_s8 = sadd.s32 %s1035_s24, %s767_s7  ;;  %s1281_s15 = int_to_ptr.vmem [resolvable:$true] %s578_s15 }
 0x389   : > { %s768_s12 = sshll.u32 %s574_s8, 7  ;;  %s1375_s29 = sand.u32 1, %s1015_s19  }
 0x38a   : > { %s576_s10 = scalar_lea.hbm %s1349_s5, %s768_s12  ;;  %s548_s30 = scalar_lea.sflag [#allocation6], %s1375_s29 }
 0x38b   : > { %s929_s0 = scalar_lea.vmem %s1281_s15, 128  ;;  %s1056_s25 = smov [#allocation5]  }
 0x38c   : > { %p930_p5 = scmp.ne.s32.totalorder %s1281_s15, %s929_s0  ;;  %s933_s11 = sshll.u32 %s1056_s25, 4  ;;  %s934_s11 = int_to_ptr.vmem [resolvable:$false] %s933_s11 }
 0x38d   : > { %s935_s24 = scalar_lea.vmem %s934_s11, 256  ;;  %p936_p8 = scmp.lt.s32.totalorder %s1281_s15, %s934_s11 }
 0x38e   : > { %p931_p3 = pnand %p930_p5, %p1187_p12  ;;  %p937_p9 = scmp.lt.s32.totalorder %s935_s24, %s929_s0 }
 0x390   : > { %p932_p6 = pneg %p931_p3  ;;  %p938_p10 = por %p937_p9, %p936_p8 }
 0x392   : > { %p939_p11 = pnand %p938_p10, %p932_p6 }
 0x394   : > { %942 = shalt.err (!%p939_p11)
}
 0x395   : > { %s943_s26 = scalar_lea.hbm %s576_s10, 128  ;;  %s947_s7 = scalar_lea.hbm %s1349_s5, 2048 }
 0x396   : > { %p944_p0 = scmp.ne.s32.totalorder %s576_s10, %s943_s26  ;;  %p948_p2 = scmp.lt.u32.totalorder %s576_s10, %s1349_s5 }
 0x397   : > { %p949_p5 = scmp.lt.u32.totalorder %s947_s7, %s943_s26  ;;  %p951_p13 = scmp.lt.u32.totalorder %s943_s26, %s576_s10 }
 0x398   : > { %p945_p1 = pnand %p944_p0, %p1187_p12 }
 0x399   : > { %p950_p3 = por %p949_p5, %p948_p2 }
 0x39a   : > { %p946_p4 = pneg %p945_p1 }
 0x39b   : > { %p952_p8 = por %p951_p13, %p950_p3 }
 0x39d   : > { %p953_p6 = pnand %p952_p8, %p946_p4 }
 0x39f   : > { %956 = shalt.err (!%p953_p6)
}
 0x3a0   : > { %796 = dma.vmem_to_hbm [thread:$0]  (%p1187_p12), %s1281_s15, 128, %s576_s10, %s548_s30  }
 0x3a1 PF: > { %p806_p9 = scmp.ge.s32.totalorder %s1051_s28, 2  ;;  %s590_s0 = sand.u32 1, %s1023_s21  }
 0x3a2   : > { %s591_s12 = scalar_lea.sflag [#allocation4], %s590_s0 }
 0x3a3   : > { %p800_p10 = pnand %p806_p9, %p1175_p7 }
 0x3a5   : > { %1002 = dma.done.wait (!%p800_p10), %s591_s12, 128  }
 0x3a6   : > { %1004 = vsyncadd (!%p800_p10), %s591_s12, 4294967168  ;;  %s599_s16 = sand.u32 1, %s1011_s18   ;;  %p1376_p13 = scmp.ne.s32.totalorder %s1371_s6, 0 }
 0x3a7   : > { %s600_s23 = scalar_lea.sflag [#allocation6], %s599_s16 }
 0x3a8   : > { %p803_p11 = pnand %p806_p9, %p1376_p13 }
 0x3aa   : > { %1006 = dma.done.wait (!%p803_p11), %s600_s23, 128  }
 0x3ab   : > { %1008 = vsyncadd (!%p803_p11), %s600_s23, 4294967168  ;;  %s22_s28 = sadd.s32 1, %s1051_s28   ;;  %s1377_s17 = sld [smem:[#allocation15_spill]] }
 0x3ac   : > { %p19_p12 = scmp.ge.s32.totalorder %s22_s28, 18   ;;  %s1378_s14 = sld [smem:[#allocation9_spill]] }
 0x3ad   : > { %s1379_s23 = sld [smem:[#allocation14_spill]]  ;;  %s1380_s24 = sld [smem:[#allocation10_spill]] }
 0x3ae   : > { %s1381_s25 = sld [smem:[#allocation11_spill]]  ;;  %s1382_s26 = sld [smem:[#allocation12_spill]] }
 0x3af   : > { %s1383_s27 = sld [smem:[#allocation13_spill]]  ;;  %s1384_s18 = smov %s1015_s19 }
 0x3b0   : > { %s1385_s19 = smov %s1019_s20  ;;  %s1387_s21 = smov %s1027_s22 }
 0x3b1   : > { %s1386_s20 = smov %s1377_s17  ;;  %21 = sbr.rel (!%p19_p12) target bundleno = 11 (0xb), region = 109 }
 0x3b2   : > { %s1388_s22 = smov %s1378_s14 }
 0x3b8   :  { %605 = vsyncpa [#allocation4], 1 }
 0x3b9   :  { %607 = vsyncpa [#allocation4 + $0x1], 1 }
 0x3ba   :  { %608 = vsyncpa [#allocation6], 1 }
 0x3bb   :  { %610 = vsyncpa [#allocation6 + $0x1], 1 }

</bundles_post_ra>
